<compile_context>
chip_gen: v6e
topology: v6e:2x2x1
jax: 0.10.0
libtpu: 0.0.40
codegen_flags: <defaults>
</compile_context>

<pallas_src>
import jax
import jax.numpy as jnp
from jax.experimental import pallas as pl
from jax.experimental.pallas import tpu as pltpu


def head1x1_kernel(x_ref, w_ref, b_ref, o_ref):
    # x_ref: (Cin, t_hw)  -- spatial on the lane axis (lane-dense)
    # w_ref: (Cout, Cin)  -- resident in VMEM (constant index_map)
    # b_ref: (Cout, 1)    -- f32 bias column, broadcast along lanes
    # o_ref: (Cout, t_hw) -- lane-dense full-width stores
    acc = jnp.dot(w_ref[...], x_ref[...], preferred_element_type=jnp.float32)
    o_ref[...] = (acc + b_ref[...]).astype(o_ref.dtype)


def _pick_spatial_tile(hw):
    """Return (tile, padded_hw). Tile is lane-dense (multiple of 128) or the
    full level; big tiles preferred to amortize per-grid-step overhead."""
    for cand in (8192, 4096, 2048, 1024, 512, 256, 128):
        if hw % cand == 0:
            return cand, hw
    if hw <= 8192:
        # Small / odd level: a single full-width block (block == full dim is legal).
        return hw, hw
    # Large level whose HW is not a multiple of 128: pad to a lane multiple so
    # the kernel stays pipelined & lane-dense instead of one giant block
    # (guards the v7x 64 MiB VMEM case flagged in review).
    hw_p = ((hw + 127) // 128) * 128
    for cand in (8192, 4096, 2048, 1024, 512, 256, 128):
        if hw_p % cand == 0:
            return cand, hw_p
    return 128, hw_p  # unreachable: hw_p is a multiple of 128


def fused_conv1x1_nchw(x_nchw, w2d, b1d, *, compute_dtype=jnp.bfloat16,
                       out_dtype=None):
    """1x1 conv on NCHW input, no input transpose.

    x_nchw: (N, Cin, H, W);  w2d: (Cout, Cin);  b1d: (Cout,)
    Returns (N, Cout, H*W) in out_dtype (defaults to x dtype).
    """
    N, Cin, H, W = x_nchw.shape
    Cout = w2d.shape[0]
    HW = H * W
    out_dtype = out_dtype or x_nchw.dtype

    # Free reshape (no data movement): channels on sublanes, spatial on lanes.
    x3d = x_nchw.reshape(N, Cin, HW).astype(compute_dtype)
    w2d = w2d.astype(compute_dtype)
    b2d = b1d.reshape(Cout, 1).astype(jnp.float32)

    t_hw, hw_p = _pick_spatial_tile(HW)
    if hw_p != HW:
        x3d = jnp.pad(x3d, ((0, 0), (0, 0), (0, hw_p - HW)))

    grid = (N, hw_p // t_hw)

    bytes_accessed = (x3d.size * x3d.dtype.itemsize
                      + w2d.size * w2d.dtype.itemsize
                      + b2d.size * b2d.dtype.itemsize
                      + N * Cout * hw_p * jnp.dtype(out_dtype).itemsize)

    out3d = pl.pallas_call(
        head1x1_kernel,
        out_shape=jax.ShapeDtypeStruct((N, Cout, hw_p), out_dtype),
        grid_spec=pltpu.PrefetchScalarGridSpec(
            num_scalar_prefetch=0,
            grid=grid,
            in_specs=[
                # Batch dim squeezed; spatial tiled along the lane axis.
                pl.BlockSpec((None, Cin, t_hw), lambda n, j: (n, 0, j)),
                # Tiny weight / bias: constant index_map -> stays resident.
                pl.BlockSpec((Cout, Cin), lambda n, j: (0, 0)),
                pl.BlockSpec((Cout, 1), lambda n, j: (0, 0)),
            ],
            out_specs=pl.BlockSpec((None, Cout, t_hw), lambda n, j: (n, 0, j)),
        ),
        compiler_params=pltpu.CompilerParams(
            dimension_semantics=("parallel", "parallel"),
            vmem_limit_bytes=32 * 1024 * 1024,
        ),
        cost_estimate=pl.CostEstimate(
            flops=2 * N * Cin * Cout * hw_p,
            transcendentals=0,
            bytes_accessed=int(bytes_accessed),
        ),
    )(x3d, w2d, b2d)

    if hw_p != HW:
        out3d = out3d[:, :, :HW]
    return out3d


def retinadet_heads_forward(features, box_params, cls_params, ldm_params,
                            num_anchors, phase="train"):
    """RetinaDet head stage.

    features   : list of per-level SSH outputs, each (N, Cin, H, W)
    *_params   : per level (weight (c, Cin, 1, 1), bias (c,)); ldm_params may be None
    Returns (box_regressions, classifications, ldm_regressions) matching the
    PyTorch forward (softmax applied to classifications when phase != 'train').
    """
    box_outs, cls_outs, ldm_outs = [], [], []
    for lvl, x in enumerate(features):
        N, Cin, H, W = x.shape
        heads = [(box_params[lvl][0], box_params[lvl][1], 4),
                 (cls_params[lvl][0], cls_params[lvl][1], 2)]
        if ldm_params is not None:
            heads.append((ldm_params[lvl][0], ldm_params[lvl][1], 10))

        # Fuse all heads of this level into one GEMM: x is read from HBM once.
        w_all = jnp.concatenate([w.reshape(w.shape[0], Cin) for (w, _, _) in heads],
                                axis=0)
        b_all = jnp.concatenate([b for (_, b, _) in heads], axis=0)

        out3d = fused_conv1x1_nchw(x, w_all, b_all)          # (N, Cout_total, HW)
        # Small output permute (Cout_total channels, not Cin): (N, HW, Cout_total)
        out = jnp.transpose(out3d, (0, 2, 1))

        off = 0
        per_head = []
        for (_, _, k) in heads:
            c = num_anchors * k
            # Matches permute(0,2,3,1).view(N, -1, k): per pixel the c channels
            # are ordered [anchor, k].
            per_head.append(out[:, :, off:off + c].reshape(N, H * W * num_anchors, k))
            off += c

        box_outs.append(per_head[0])
        cls_outs.append(per_head[1])
        if ldm_params is not None:
            ldm_outs.append(per_head[2])

    box_regressions = jnp.concatenate(box_outs, axis=1)
    classifications = jnp.concatenate(cls_outs, axis=1)
    ldm_regressions = (jnp.concatenate(ldm_outs, axis=1)
                       if ldm_params is not None else None)
    if phase != "train":
        classifications = jax.nn.softmax(classifications, axis=-1)
    return box_regressions, classifications, ldm_regressions


if __name__ == "__main__":
    # Small shapes consistent with RetinaDet defaults: out_channels=64,
    # anchor_num=2, 3 FPN levels.
    N = 2
    Cin = 64
    num_anchors = 2
    level_hw = [(16, 16), (8, 8), (4, 4)]

    key = jax.random.PRNGKey(0)
    keys = iter(jax.random.split(key, 32))

    def nrm(shape, scale=1.0):
        return jax.random.normal(next(keys), shape, jnp.float32) * scale

    # TODO(synk): backbone / FPN neck / SSH plugins are config-built external
    # modules (build_backbone / build_neck / build_plugin) with no definition
    # in the spec; synthetic per-level feature maps stand in for SSH outputs.
    features = [nrm((N, Cin, H, W)) for (H, W) in level_hw]
    box_params = [(nrm((num_anchors * 4, Cin, 1, 1), 0.05),
                   nrm((num_anchors * 4,), 0.01)) for _ in level_hw]
    cls_params = [(nrm((num_anchors * 2, Cin, 1, 1), 0.05),
                   nrm((num_anchors * 2,), 0.01)) for _ in level_hw]
    ldm_params = [(nrm((num_anchors * 10, Cin, 1, 1), 0.05),
                   nrm((num_anchors * 10,), 0.01)) for _ in level_hw]

    box, cls_probs, ldm = retinadet_heads_forward(
        features, box_params, cls_params, ldm_params, num_anchors, phase="test")
    box, cls_probs, ldm = jax.block_until_ready((box, cls_probs, ldm))

    # Reference: plain-JAX f32 1x1 conv + permute + view (PyTorch semantics).
    def ref_head(x, w, b, k):
        Nn, C, H, W = x.shape
        Cout = w.shape[0]
        o = jnp.einsum("nchw,oc->nhwo", x, w.reshape(Cout, C)) + b
        return o.reshape(Nn, H * W * num_anchors, k)

    ref_box = jnp.concatenate(
        [ref_head(f, box_params[i][0], box_params[i][1], 4)
         for i, f in enumerate(features)], axis=1)
    ref_cls = jax.nn.softmax(jnp.concatenate(
        [ref_head(f, cls_params[i][0], cls_params[i][1], 2)
         for i, f in enumerate(features)], axis=1), axis=-1)
    ref_ldm = jnp.concatenate(
        [ref_head(f, ldm_params[i][0], ldm_params[i][1], 10)
         for i, f in enumerate(features)], axis=1)

    total_anchors = sum(H * W for (H, W) in level_hw) * num_anchors
    assert box.shape == (N, total_anchors, 4)
    assert cls_probs.shape == (N, total_anchors, 2)
    assert ldm.shape == (N, total_anchors, 10)
    # bf16 MXU compute vs f32 reference -> loose-but-meaningful tolerance.
    assert jnp.allclose(box, ref_box, atol=2e-2, rtol=2e-2)
    assert jnp.allclose(cls_probs, ref_cls, atol=2e-2, rtol=2e-2)
    assert jnp.allclose(ldm, ref_ldm, atol=2e-2, rtol=2e-2)

    print("KERNEL_OK")
</pallas_src>

<mosaic_0001>
module attributes {stable_mosaic.version = 11 : i64} {
  func.func @head1x1_kernel(%arg0: i32, %arg1: i32, %arg2: memref<1x64x256xbf16, #tpu.memory_space<vmem>>, %arg3: memref<32x64xbf16, #tpu.memory_space<vmem>>, %arg4: memref<32x1xf32, #tpu.memory_space<vmem>>, %arg5: memref<1x32x256xf32, #tpu.memory_space<vmem>>) attributes {dimension_semantics = [#tpu.dimension_semantics<parallel>, #tpu.dimension_semantics<parallel>], iteration_bounds = array<i64: 2, 1>, scalar_prefetch = 0 : i64, scratch_operands = 0 : i64, tpu.core_type = #tpu.core_type<tc>, window_params = [{transform_indices = @transform_0, window_bounds = array<i64: 1, 64, 256>}, {pipeline_mode = #tpu.pipeline_mode<synchronous>, transform_indices = @transform_1, window_bounds = array<i64: 32, 64>}, {pipeline_mode = #tpu.pipeline_mode<synchronous>, transform_indices = @transform_2, window_bounds = array<i64: 32, 1>}, {transform_indices = @transform_3, window_bounds = array<i64: 1, 32, 256>}]} {
    %c0 = arith.constant 0 : index
    %c0_0 = arith.constant 0 : index
    %0 = vector.load %arg3[%c0, %c0_0] : memref<32x64xbf16, #tpu.memory_space<vmem>>, vector<32x64xbf16>
    %c0_1 = arith.constant 0 : index
    %c0_2 = arith.constant 0 : index
    %c0_3 = arith.constant 0 : index
    %1 = vector.load %arg2[%c0_1, %c0_2, %c0_3] : memref<1x64x256xbf16, #tpu.memory_space<vmem>>, vector<1x64x256xbf16>
    %2 = vector.shape_cast %1 : vector<1x64x256xbf16> to vector<64x256xbf16>
    %cst = arith.constant dense<0.000000e+00> : vector<32x256xf32>
    %3 = tpu.matmul %0, %2, %cst {dimension_numbers = #tpu.dot_dimension_numbers<[1], [0], [0], [1], [0, 0, 1, 1], [], []>} : vector<32x64xbf16>, vector<64x256xbf16>, vector<32x256xf32> -> vector<32x256xf32>
    %c0_4 = arith.constant 0 : index
    %c0_5 = arith.constant 0 : index
    %4 = vector.load %arg4[%c0_4, %c0_5] : memref<32x1xf32, #tpu.memory_space<vmem>>, vector<32x1xf32>
    %5 = vector.broadcast %4 : vector<32x1xf32> to vector<32x256xf32>
    %6 = arith.addf %3, %5 : vector<32x256xf32>
    %c0_6 = arith.constant 0 : index
    %c0_7 = arith.constant 0 : index
    %c0_8 = arith.constant 0 : index
    %7 = vector.load %arg5[%c0_6, %c0_7, %c0_8] : memref<1x32x256xf32, #tpu.memory_space<vmem>>, vector<1x32x256xf32>
    %8 = vector.shape_cast %7 : vector<1x32x256xf32> to vector<32x256xf32>
    %9 = vector.shape_cast %6 : vector<32x256xf32> to vector<1x32x256xf32>
    tpu.vector_store %arg5[%c0_6, %c0_7, %c0_8], %9 {strides = array<i32>} : memref<1x32x256xf32, #tpu.memory_space<vmem>>, vector<1x32x256xf32>,
    return
  }
  func.func @transform_0(%arg0: i32, %arg1: i32) -> (i32, i32, i32) {
    %c0_i32 = arith.constant 0 : i32
    %c0_i32_0 = arith.constant 0 : i32
    return %arg0, %c0_i32, %arg1 : i32, i32, i32
  }
  func.func @transform_1(%arg0: i32, %arg1: i32) -> (i32, i32) {
    %c0_i32 = arith.constant 0 : i32
    %c0_i32_0 = arith.constant 0 : i32
    %c0_i32_1 = arith.constant 0 : i32
    return %c0_i32, %c0_i32_0 : i32, i32
  }
  func.func @transform_2(%arg0: i32, %arg1: i32) -> (i32, i32) {
    %c0_i32 = arith.constant 0 : i32
    %c0_i32_0 = arith.constant 0 : i32
    %c0_i32_1 = arith.constant 0 : i32
    return %c0_i32, %c0_i32_0 : i32, i32
  }
  func.func @transform_3(%arg0: i32, %arg1: i32) -> (i32, i32, i32) {
    %c0_i32 = arith.constant 0 : i32
    %c0_i32_0 = arith.constant 0 : i32
    return %arg0, %c0_i32, %arg1 : i32, i32, i32
  }
}

</mosaic_0001>

<bundles_post_ra>
// kernel: tpu_custom_call.1
= control target key start
LH: loop header
LB: loop body
LE: loop exit
PB: predicated region body
PF: predicated region fallthrough
CT: control target
= control target key end

     0   :  { %8 = vsyncpa [#allocation3], 0  ;;  %s902_s0 = inlined_call_operand.hbm [shape: bf16[2,64,256], index: 0, kind: input, shape index: {}]   ;;  %s903_s1 = inlined_call_operand.vmem [shape: bf16[32,64], index: 1, kind: input, shape index: {}]   ;;  %s904_s2 = inlined_call_operand.vmem [shape: f32[32,1], index: 2, kind: input, shape index: {}]   ;;  %s905_s3 = inlined_call_operand.hbm [shape: f32[2,32,256], index: 3, kind: output, shape index: {}]  }
   0x1   :  { %10 = vsyncpa [#allocation3 + $0x1], 0 }
   0x2   :  { %11 = vsyncpa [#allocation4], 0 }
   0x3   :  { %13 = vsyncpa [#allocation4 + $0x1], 0  ;;  %s724_s12 = smov 0   ;;  %s726_s13 = smov 0  }
   0x4   :  { %s728_s14 = smov 0   ;;  %s730_s15 = smov 0  }
   0x5   :  { %s732_s16 = smov 0   ;;  %s734_s17 = smov 0  }
   0x6 LB: > { %s467_s18 = sadd.s32 4294967295, %s695_s17   ;;  %s468_s19 = sadd.s32 4294967294, %s695_s17   ;;  %s695_s17 = sphi %s734_s17, %s19_s17   ;;  %s691_s16 = sphi %s732_s16, %s916_s16   ;;  %s687_s15 = sphi %s730_s15, %s915_s15   ;;  %s683_s14 = sphi %s728_s14, %s914_s14   ;;  %s679_s13 = sphi %s726_s13, %s913_s13   ;;  %s675_s12 = sphi %s724_s12, %s912_s12  }
   0x7   : > { %s31_s20 = sadd.s32 1, %s691_s16  ;;  %s40_s21 = sadd.s32 1, %s683_s14 }
   0x8   : > { %p33_p0 = scmp.ge.s32.totalorder %s31_s20, 2  ;;  %p47_p1 = scmp.ne.s32.totalorder %s683_s14, %s679_s13 }
   0x9   : > { %p48_p2 = scmp.eq.s32.totalorder %s695_s17, 0  ;;  %p53_p3 = scmp.ne.s32.totalorder %s679_s13, %s675_s12 }
   0xa   : > { %s918_s20 = smov (%p33_p0, %s31_s20), 0  ;;  %p54_p5 = scmp.eq.s32.totalorder %s467_s18, 0 }
   0xb   : > { %p765_p4 = por %p48_p2, %p47_p1  ;;  %s35_s23 = ssub.s32 %s691_s16, %s918_s20 }
   0xc   : > { %p121_p6 = scmp.eq.s32.totalorder %s467_s18, 1  ;;  %p38_p7 = scmp.eq.s32.totalorder %s35_s23, 0 }
   0xd   : > { %p771_p8 = por %p54_p5, %p53_p3  ;;  %p127_p10 = scmp.eq.s32.totalorder %s468_s19, 1 }
   0xe   : > { %p775_p9 = por %p121_p6, %p47_p1  ;;  %p516_p13 = scmp.lt.s32.totalorder %s695_s17, 2 }
   0xf   : > { %s780_s26 = scalar_select %p38_p7, %s683_s14, %s40_s21  }
  0x10   : > { %p782_p11 = por %p127_p10, %p53_p3  ;;  %s153_s28 = sand.u32 1, %s683_s14  }
  0x11   : > { %s471_s29 = sshll.u32 %s153_s28, 6  ;;  %s494_s30 = sshll.u32 %s691_s16, 10 }
  0x12   : > { %s165_s6 = scalar_lea.hbm %s902_s0, %s494_s30  ;;  %s157_s7 = scalar_lea.vmem [#allocation2], %s471_s29 }
  0x13   : > { %s166_s8 = sshll.u32 %s157_s7, 4  ;;  %p795_p0 = pnand %p516_p13, %p765_p4  ;;  %s167_s8 = int_to_ptr.vmem [resolvable:$true] %s166_s8 }
  0x14   : > { %p474_p1 = scmp.ge.s32.totalorder %s695_s17, 1  ;;  %s154_s10 = scalar_lea.sflag [#allocation3], %s153_s28 }
  0x15   : > { %p589_p2 = pneg %p795_p0  ;;  %s600_s11 = scalar_lea.vmem %s167_s8, 1024 }
  0x16   : > { %p601_p3 = scmp.ne.s32.totalorder %s167_s8, %s600_s11  ;;  %s697_s18 = smov [#allocation2]  }
  0x17   : > { %s605_s19 = sshll.u32 %s697_s18, 4  ;;  %s606_s19 = int_to_ptr.vmem [resolvable:$false] %s605_s19 }
  0x18   : > { %p603_p5 = pnand %p601_p3, %p589_p2  ;;  %s607_s21 = scalar_lea.vmem %s606_s19, 2048 }
  0x19   : > { %p608_p7 = scmp.lt.s32.totalorder %s167_s8, %s606_s19  ;;  %p609_p10 = scmp.lt.s32.totalorder %s607_s21, %s600_s11 }
  0x1a   : > { %p604_p6 = pneg %p603_p5 }
  0x1b   : > { %p610_p12 = por %p609_p10, %p608_p7 }
  0x1d   : > { %p611_p4 = pnand %p610_p12, %p604_p6 }
  0x1f   : > { %614 = shalt.err (!%p611_p4)
}
  0x20   : > { %s698_s22 = smov 128   ;;  %s699_s23 = smov 8  }
  0x21   : > { %511 = dma.hbm_to_vmem [thread:$0]  (!%p795_p0), %s165_s6, 1024, %s167_s8, %s154_s10, %s698_s22, %s698_s22, %s699_s23  }
  0x22   : > { %p174_p13 = scmp.lt.s32.totalorder %s695_s17, 3 }
  0x24   : > { %p175_p2 = pnand %p474_p1, %p174_p13 }
  0x25   : > { %s808_s28 = sand.u32 (!%p175_p2), 1, %s679_s13  }
  0x26   : > { %178 = sbr.rel (%p175_p2) target bundleno = 278 (0x116), region = 32  ;;  %s475_s29 = sshll.u32 (!%p175_p2), %s808_s28, 6 }
  0x27   : > { %s181_s30 = scalar_lea.sflag (!%p175_p2), [#allocation3], %s808_s28  ;;  %s814_s4 = scalar_lea.vmem (!%p175_p2), [#allocation2], %s475_s29 }
  0x2b   : > { %666 = dma.done.wait (%p771_p8), %s181_s30, 1024  }
  0x2c   : > { %668 = vsyncadd (%p771_p8), %s181_s30, 4294966272  ;;  %v700_v0 = vmov 0   ;;  %v573_v1 = vld [vmem:[%s814_s4 + $0x34] ss:$8 sps:$4 sm:$0xff]   ;;  %v575_v2 = vld [vmem:[%s814_s4 + $0x30] ss:$8 sps:$4 sm:$0xff]  }
  0x2d   : > { %335 = vmatprep.mubr.bf16.mxu0 %v700_v0  ;;  %345 = vmatprep.mubr.bf16.mxu1 %v700_v0  ;;  %v576_v3 = vld [vmem:[%s814_s4 + $0x24] ss:$8 sps:$4 sm:$0xff]   ;;  %v578_v4 = vld [vmem:[%s814_s4 + $0x20] ss:$8 sps:$4 sm:$0xff]   ;;  %v579_v5 = vld [vmem:[%s814_s4 + $0x14] ss:$8 sps:$4 sm:$0xff]  }
  0x2e   : > { %572 = vset.pattern.permute.xlu1 %v700_v0  ;;  %571 = vset.pattern.permute.xlu0 %v700_v0  ;;  %v581_v6 = vld [vmem:[%s814_s4 + $0x10] ss:$8 sps:$4 sm:$0xff]   ;;  %v222_v8 = vld [vmem:[%s904_s2] sm:$0xff]  ;;  %v223_v11 = vld [vmem:[%s904_s2 + $0x8] sm:$0xff]  ;;  %vm296_vm0 = vcmask 523264   ;;  %s206_s23 = scalar_lea.vmem [#allocation5], %s475_s29 }
  0x2f   : > { %311 = vmatprep.subr.bf16.mxu0 %v573_v1  ;;  %496 = vmatprep.subr.bf16.mxu1 %v573_v1  ;;  %v224_v7 = vld [vmem:[%s904_s2 + $0x10] sm:$0xff]  ;;  %v582_v9 = vld [vmem:[%s814_s4 + $0x4] ss:$8 sps:$4 sm:$0xff]   ;;  %v225_v10 = vld [vmem:[%s904_s2 + $0x18] sm:$0xff]  ;;  %s380_s30 = sshll.u32 %s206_s23, 4  ;;  %s701_s7 = smov [#allocation5]   ;;  %s849_s30 = int_to_ptr.vmem [resolvable:$true] %s380_s30 }
  0x30   : > { %312 = vmatpush1.bf16.msra.mxu0 %v575_v2  ;;  %500 = vmatpush1.bf16.msra.mxu1 %v575_v2  ;;  %v584_v12 = vld [vmem:[%s814_s4] ss:$8 sps:$4 sm:$0xff]   ;;  %s495_s4 = sshll.u32 %s687_s15, 10  ;;  %s365_s15 = scalar_lea.sflag [#allocation4], %s808_s28 }
  0x31   : > { %313 = vmatprep.subr.bf16.mxu0 %v576_v3  ;;  %497 = vmatprep.subr.bf16.mxu1 %v576_v3  ;;  %v585_v13 = vld [vmem:[%s903_s1] sm:$0xff]   ;;  %v586_v14 = vld [vmem:[%s903_s1 + $0x8] sm:$0xff]   ;;  %s854_s5 = scalar_lea.hbm %s905_s3, %s495_s4  ;;  %s615_s6 = scalar_lea.vmem %s849_s30, 1024 }
  0x32   : > { %238 = vperm.xlu1 %572, %v224_v7   ;;  %228 = vperm.xlu0 %571, %v222_v8   ;;  %p616_p8 = scmp.ne.s32.totalorder %s849_s30, %s615_s6  ;;  %s619_s8 = sshll.u32 %s701_s7, 4  ;;  %s620_s8 = int_to_ptr.vmem [resolvable:$false] %s619_s8 }
  0x33   : > { %s621_s9 = scalar_lea.vmem %s620_s8, 2048  ;;  %p622_p1 = scmp.lt.s32.totalorder %s849_s30, %s620_s8 }
  0x34   : > { %314 = vmatpush1.bf16.msra.mxu0 %v578_v4  ;;  %501 = vmatpush1.bf16.msra.mxu1 %v578_v4  ;;  %p617_p12 = pnand %p616_p8, %p775_p9  ;;  %p623_p3 = scmp.lt.s32.totalorder %s621_s9, %s615_s6 }
  0x35   : > { %315 = vmatprep.subr.bf16.mxu0 %v579_v5  ;;  %498 = vmatprep.subr.bf16.mxu1 %v579_v5 }
  0x36   : > { %243 = vperm.xlu1 %572, %v225_v10   ;;  %233 = vperm.xlu0 %571, %v223_v11   ;;  %p618_p0 = pneg %p617_p12  ;;  %p624_p5 = por %p623_p3, %p622_p1 }
  0x38   : > { %316 = vmatpush1.bf16.msra.mxu0 %v581_v6  ;;  %502 = vmatpush1.bf16.msra.mxu1 %v581_v6  ;;  %p625_p6 = pnand %p624_p5, %p618_p0 }
  0x39   : > { %317 = vmatprep.subr.bf16.mxu0 %v582_v9  ;;  %499 = vmatprep.subr.bf16.mxu1 %v582_v9 }
  0x3c   : > { %318 = vmatpush1.bf16.msra.mxu0 %v584_v12  ;;  %503 = vmatpush1.bf16.msra.mxu1 %v584_v12 }
  0x3f   : > { %487 = vmatmul.mubr.msk.bf16.vlgmr.msra.gmra.mxu0 %vm296_vm0, %v585_v13  ;;  %488 = vmatmul.mubr.msk.bf16.vlgmr.msra.gmra.mxu1 %vm296_vm0, %v586_v14 }
  0xad   : > { %v239_v15 = vpop.permute.xlu1 %238  ;;  %v229_v16 = vpop.permute.xlu0 %228 }
  0xb1   : > { %v244_v23 = vpop.permute.xlu1 %243  ;;  %v234_v24 = vpop.permute.xlu0 %233 }
  0xff   : > { %v337_v17 = vpop.f32.mrf.mxu0  ;;  %v347_v18 = vpop.f32.mrf.mxu1 }
 0x100   : > { %v338_v19 = vadd.f32 %v337_v17, %v229_v16  ;;  %v348_v20 = vadd.f32 %v347_v18, %v239_v15 }
 0x101   : > { %v339_v21 = vpop.f32.mrf.mxu0  ;;  %v349_v22 = vpop.f32.mrf.mxu1 }
 0x102   : > { %356 = vst [vmem:[%s206_s23] sm:$0xff] %v338_v19  ;;  %360 = vst [vmem:[%s206_s23 + $0x20] sm:$0xff] %v348_v20  ;;  %v340_v25 = vadd.f32 %v339_v21, %v229_v16  ;;  %v350_v26 = vadd.f32 %v349_v22, %v239_v15 }
 0x103   : > { %v341_v27 = vpop.f32.mrf.mxu0  ;;  %v351_v28 = vpop.f32.mrf.mxu1 }
 0x104   : > { %357 = vst [vmem:[%s206_s23 + $0x8] sm:$0xff] %v340_v25  ;;  %361 = vst [vmem:[%s206_s23 + $0x28] sm:$0xff] %v350_v26  ;;  %v342_v29 = vadd.f32 %v341_v27, %v234_v24  ;;  %v352_v30 = vadd.f32 %v351_v28, %v244_v23 }
 0x105   : > { %v343_v31 = vpop.f32.mrf.mxu0  ;;  %v353_v32 = vpop.f32.mrf.mxu1 }
 0x106   : > { %358 = vst [vmem:[%s206_s23 + $0x10] sm:$0xff] %v342_v29  ;;  %362 = vst [vmem:[%s206_s23 + $0x30] sm:$0xff] %v352_v30  ;;  %v344_v33 = vadd.f32 %v343_v31, %v234_v24  ;;  %v354_v34 = vadd.f32 %v353_v32, %v244_v23 }
 0x108   : > { %359 = vst [vmem:[%s206_s23 + $0x18] sm:$0xff] %v344_v33  ;;  %363 = vst [vmem:[%s206_s23 + $0x38] sm:$0xff] %v354_v34 }
 0x109   : > { %628 = shalt.err (!%p625_p6)
}
 0x10a   : > { %s629_s10 = scalar_lea.hbm %s854_s5, 1024  ;;  %s633_s19 = scalar_lea.hbm %s905_s3, 2048 }
 0x10b   : > { %p630_p7 = scmp.ne.s32.totalorder %s854_s5, %s629_s10  ;;  %p634_p13 = scmp.lt.s32.totalorder %s854_s5, %s905_s3 }
 0x10c   : > { %p635_p2 = scmp.lt.s32.totalorder %s633_s19, %s629_s10 }
 0x10d   : > { %p631_p10 = pnand %p630_p7, %p775_p9 }
 0x10e   : > { %p636_p8 = por %p635_p2, %p634_p13 }
 0x10f   : > { %p632_p4 = pneg %p631_p10 }
 0x111   : > { %p637_p12 = pnand %p636_p8, %p632_p4 }
 0x113   : > { %640 = shalt.err (!%p637_p12)
}
 0x114   : > { %s702_s23 = smov 256   ;;  %s703_s4 = smov 16  }
 0x115   : > { %506 = dma.vmem_to_hbm [thread:$0]  (%p775_p9), %s849_s30, 1024, %s854_s5, %s365_s15, %s702_s23, %s702_s23, %s703_s4  }
 0x116 PF: > { %s395_s29 = sand.u32 1, %s675_s12   ;;  %p911_p0 = scmp.ge.s32.totalorder %s695_s17, 2 }
 0x117   : > { %s396_s24 = scalar_lea.sflag [#allocation4], %s395_s29 }
 0x118   : > { %p513_p1 = pnand %p911_p0, %p782_p11 }
 0x11a   : > { %p514_p3 = pneg %p513_p1 }
 0x11c   : > { %670 = dma.done.wait (%p514_p3), %s396_s24, 1024  }
 0x11d   : > { %672 = vsyncadd (%p514_p3), %s396_s24, 4294966272  ;;  %s19_s17 = sadd.s32 1, %s695_s17   ;;  %s912_s12 = smov %s679_s13 }
 0x11e   : > { %p16_p5 = scmp.ge.s32.totalorder %s19_s17, 4   ;;  %s913_s13 = smov %s683_s14 }
 0x11f   : > { %s914_s14 = smov %s780_s26  ;;  %s915_s15 = smov %s691_s16 }
 0x120   : > { %s916_s16 = smov %s918_s20  ;;  %18 = sbr.rel (!%p16_p5) target bundleno = 6 (0x6), region = 77 }
 0x125   :  { %401 = vsyncpa [#allocation3], 1 }
 0x126   :  { %403 = vsyncpa [#allocation3 + $0x1], 1 }
 0x127   :  { %404 = vsyncpa [#allocation4], 1 }
 0x128   :  { %406 = vsyncpa [#allocation4 + $0x1], 1 }

</bundles_post_ra>
